<compile_context>
chip_gen: v7x
topology: tpu7x:2x2x1
jax: 0.10.0
libtpu: 0.0.40
codegen_flags: <defaults>
</compile_context>

<pallas_src>
import functools

import jax
import jax.numpy as jnp
from jax.experimental import pallas as pl
from jax.experimental.pallas import tpu as pltpu


def _focal_loss_kernel(x_ref, lbl_ref, out_ref, acc_ref, *,
                       s_valid, gamma, final_scale, alpha_vals):
    b = pl.program_id(0)
    s = pl.program_id(1)

    @pl.when(jnp.logical_and(b == 0, s == 0))
    def _init():
        acc_ref[...] = jnp.zeros_like(acc_ref)

    x = x_ref[...].astype(jnp.float32)        # (C, T) class-major, lane-dense
    lbl = lbl_ref[...]                        # (1, T) int32 class ids

    # log-softmax over the class axis (sublanes): per-column logsumexp only,
    # no full (C, T) normalization divide.
    m = jnp.max(x, axis=0, keepdims=True)                     # (1, T)
    e = jnp.exp(x - m)                                        # (C, T)
    lse = m + jnp.log(jnp.sum(e, axis=0, keepdims=True))      # (1, T)

    # gather logits at the target class with an iota compare (no real gather)
    row = jax.lax.broadcasted_iota(jnp.int32, x.shape, 0)     # (C, T)
    one_hot = (row == lbl).astype(jnp.float32)                # (C, T)
    x_t = jnp.sum(one_hot * x, axis=0, keepdims=True)         # (1, T)

    logpt = x_t - lse                                         # (1, T) = log p_t
    pt = jnp.exp(logpt)                                       # (1, T)

    if alpha_vals is not None:
        # alpha[target] from compile-time scalars: C cheap VPU selects on (1,T)
        at = jnp.zeros_like(logpt)
        for ci, av in enumerate(alpha_vals):
            at = at + jnp.where(lbl == ci, jnp.float32(av), jnp.float32(0.0))
        logpt = logpt * at

    one_minus_pt = jnp.maximum(1.0 - pt, 0.0)                 # guard fp noise
    if gamma == 0.0:
        weight = jnp.ones_like(pt)
    elif gamma == 0.5:
        weight = jnp.sqrt(one_minus_pt)
    elif gamma == 1.0:
        weight = one_minus_pt
    elif gamma == 2.0:
        weight = one_minus_pt * one_minus_pt
    else:
        weight = jnp.power(one_minus_pt, gamma)
    loss = -weight * logpt                                    # (1, T)

    # mask the ragged tail block (no wrapper-side padding): garbage columns
    # past S are zeroed here, before any reduction touches them.
    tile = x.shape[1]
    col = jax.lax.broadcasted_iota(jnp.int32, (1, tile), 1) + s * tile
    loss = jnp.where(col < s_valid, loss, 0.0)

    # per-lane partial sums only; the cross-lane reduce is done once at the end
    acc_ref[...] += loss

    @pl.when(jnp.logical_and(b == pl.num_programs(0) - 1,
                             s == pl.num_programs(1) - 1))
    def _finalize():
        total = jnp.sum(acc_ref[...], keepdims=True)          # (1, 1)
        out_ref[...] = (total * final_scale).astype(out_ref.dtype)


def focal_loss(logits, target, *, gamma=0.5, alpha=None, size_average=True,
               tile_n=8192):
    """Pallas TPU focal loss. logits: (N, C) or (B, C, *spatial); target: ints."""
    x = jnp.asarray(logits)
    t = jnp.asarray(target).reshape(-1).astype(jnp.int32)

    if x.ndim > 2:
        # Keep native (B, C, S) layout — no HBM relayout, reshape is free.
        B, C = int(x.shape[0]), int(x.shape[1])
        S = 1
        for d in x.shape[2:]:
            S *= int(d)
        x3 = x.reshape(B, C, S)
    else:
        # (N, C) -> class-major (C, N).
        # TODO(synk): this small transpose is the only wrapper-side relayout;
        # a class-major producer (or allow_input_fusion) would remove it.
        N, C = int(x.shape[0]), int(x.shape[1])
        B, S = 1, N
        x3 = x.T.reshape(1, C, N)

    n_total = B * S
    assert t.shape[0] == n_total, "target count must match flattened logits rows"
    t3 = t.reshape(B, 1, S)

    # alpha handling (PyTorch-compatible); baked in as compile-time constants.
    if isinstance(alpha, (float, int)):
        alpha = [float(alpha), 1.0 - float(alpha)]
    alpha_vals = tuple(float(a) for a in alpha) if alpha is not None else None

    # Sample-axis tile: large (amortize per-grid-step overhead), lane-aligned;
    # if the whole axis fits, take it in a single full-extent block.
    tile_n = max(128, (int(tile_n) // 128) * 128)
    tile = S if S <= tile_n else tile_n
    num_tiles = pl.cdiv(S, tile)

    final_scale = (1.0 / n_total) if size_average else 1.0
    kernel = functools.partial(
        _focal_loss_kernel,
        s_valid=S, gamma=float(gamma), final_scale=float(final_scale),
        alpha_vals=alpha_vals)

    itemsize = jnp.dtype(x.dtype).itemsize
    cost = pl.CostEstimate(
        flops=n_total * (8 * C + 12),
        transcendentals=n_total * (C + 3),
        bytes_accessed=n_total * C * itemsize + n_total * 4 + 4)

    out = pl.pallas_call(
        kernel,
        out_shape=jax.ShapeDtypeStruct((1, 1), jnp.float32),
        grid_spec=pltpu.PrefetchScalarGridSpec(
            num_scalar_prefetch=0,
            grid=(B, num_tiles),
            in_specs=[
                pl.BlockSpec((None, C, tile), lambda b, s: (b, 0, s)),
                pl.BlockSpec((None, 1, tile), lambda b, s: (b, 0, s)),
            ],
            out_specs=pl.BlockSpec((1, 1), lambda b, s: (0, 0)),
            scratch_shapes=[pltpu.VMEM((1, tile), jnp.float32)],
        ),
        compiler_params=pltpu.CompilerParams(
            dimension_semantics=("arbitrary", "arbitrary")),  # acc across grid
        cost_estimate=cost,
    )(x3, t3)
    return out[0, 0]


def _focal_loss_ref(logits, target, *, gamma=0.5, alpha=None, size_average=True):
    x = jnp.asarray(logits, jnp.float32)
    if x.ndim > 2:
        b, c = x.shape[0], x.shape[1]
        x = jnp.swapaxes(x.reshape(b, c, -1), 1, 2).reshape(-1, c)
    t = jnp.asarray(target).reshape(-1)
    logp = jax.nn.log_softmax(x, axis=1)
    logpt = jnp.take_along_axis(logp, t[:, None], axis=1)[:, 0]
    pt = jnp.exp(logpt)
    if alpha is not None:
        if isinstance(alpha, (float, int)):
            alpha = [float(alpha), 1.0 - float(alpha)]
        a = jnp.asarray(alpha, jnp.float32)
        logpt = logpt * a[t]
    loss = -((1.0 - pt) ** gamma) * logpt
    return loss.mean() if size_average else loss.sum()


if __name__ == "__main__":
    key = jax.random.PRNGKey(0)
    k1, k2, k3, k4 = jax.random.split(key, 4)

    # Case 1: 2-D logits (N, C), module defaults (gamma=0.5, alpha=None, mean).
    n, c = 96, 5
    logits = jax.random.normal(k1, (n, c), dtype=jnp.float32)
    target = jax.random.randint(k2, (n,), 0, c, dtype=jnp.int32)
    out1 = jax.block_until_ready(focal_loss(logits, target, gamma=0.5))
    ref1 = _focal_loss_ref(logits, target, gamma=0.5)
    assert jnp.allclose(out1, ref1, atol=1e-5, rtol=1e-5), (out1, ref1)

    # Case 2: 4-D logits (B, C, H, W) with per-class alpha, gamma=2, sum.
    b, c2, h, w = 2, 4, 8, 8
    logits4 = jax.random.normal(k3, (b, c2, h, w), dtype=jnp.float32)
    target4 = jax.random.randint(k4, (b, h, w), 0, c2, dtype=jnp.int32)
    alpha = [0.1, 0.2, 0.3, 0.4]
    out2 = jax.block_until_ready(
        focal_loss(logits4, target4, gamma=2.0, alpha=alpha, size_average=False))
    ref2 = _focal_loss_ref(logits4, target4, gamma=2.0, alpha=alpha,
                           size_average=False)
    assert jnp.allclose(out2, ref2, atol=1e-4, rtol=1e-5), (out2, ref2)

    # Case 3: non-tile-aligned sample axis exercises the ragged tail mask
    # (tile_n forced small so multiple grid steps + an OOB tail block occur).
    n3, c3 = 300, 7
    logits3 = jax.random.normal(k1, (n3, c3), dtype=jnp.bfloat16)
    target3 = jax.random.randint(k2, (n3,), 0, c3, dtype=jnp.int32)
    out3 = jax.block_until_ready(
        focal_loss(logits3, target3, gamma=1.0, tile_n=128))
    ref3 = _focal_loss_ref(logits3.astype(jnp.float32), target3, gamma=1.0)
    assert jnp.allclose(out3, ref3, atol=1e-2, rtol=1e-2), (out3, ref3)

    print("KERNEL_OK")
</pallas_src>

<mosaic_0001>
module attributes {stable_mosaic.version = 11 : i64} {
  func.func @_focal_loss_kernel(%arg0: i32, %arg1: i32, %arg2: memref<1x5x96xf32, #tpu.memory_space<vmem>>, %arg3: memref<1x1x96xi32, #tpu.memory_space<vmem>>, %arg4: memref<1x1xf32, #tpu.memory_space<vmem>>, %arg5: memref<1x96xf32, #tpu.memory_space<vmem>>) attributes {dimension_semantics = [#tpu.dimension_semantics<arbitrary>, #tpu.dimension_semantics<arbitrary>], iteration_bounds = array<i64: 1, 1>, scalar_prefetch = 0 : i64, scratch_operands = 1 : i64, tpu.core_type = #tpu.core_type<tc>, window_params = [{transform_indices = @transform_0, window_bounds = array<i64: 1, 5, 96>}, {transform_indices = @transform_1, window_bounds = array<i64: 1, 1, 96>}, {pipeline_mode = #tpu.pipeline_mode<synchronous>, transform_indices = @transform_2, window_bounds = array<i64: 1, 1>}]} {
    %c0_i32 = arith.constant 0 : i32
    %0 = arith.cmpi eq, %arg0, %c0_i32 : i32
    %c0_i32_0 = arith.constant 0 : i32
    %1 = arith.cmpi eq, %arg1, %c0_i32_0 : i32
    %2 = arith.andi %0, %1 : i1
    %3 = arith.extui %2 : i1 to i32
    %c0_i32_1 = arith.constant 0 : i32
    %4 = arith.cmpi ne, %3, %c0_i32_1 : i32
    scf.if %4 {
      %cst_21 = arith.constant 0.000000e+00 : f32
      %52 = vector.broadcast %cst_21 : f32 to vector<1x96xf32>
      %c0_22 = arith.constant 0 : index
      %c0_23 = arith.constant 0 : index
      %53 = vector.load %arg5[%c0_22, %c0_23] : memref<1x96xf32, #tpu.memory_space<vmem>>, vector<1x96xf32>
      tpu.vector_store %arg5[%c0_22, %c0_23], %52 {strides = array<i32>} : memref<1x96xf32, #tpu.memory_space<vmem>>, vector<1x96xf32>,
    } else {
    }
    %c0 = arith.constant 0 : index
    %c0_2 = arith.constant 0 : index
    %c0_3 = arith.constant 0 : index
    %5 = vector.load %arg2[%c0, %c0_2, %c0_3] : memref<1x5x96xf32, #tpu.memory_space<vmem>>, vector<1x5x96xf32>
    %6 = vector.shape_cast %5 : vector<1x5x96xf32> to vector<5x96xf32>
    %c0_4 = arith.constant 0 : index
    %c0_5 = arith.constant 0 : index
    %c0_6 = arith.constant 0 : index
    %7 = vector.load %arg3[%c0_4, %c0_5, %c0_6] : memref<1x1x96xi32, #tpu.memory_space<vmem>>, vector<1x1x96xi32>
    %8 = vector.shape_cast %7 : vector<1x1x96xi32> to vector<1x96xi32>
    %cst = arith.constant dense<0xFF800000> : vector<96xf32>
    %9 = vector.multi_reduction <maximumf>, %6, %cst [0] : vector<5x96xf32> to vector<96xf32>
    %10 = vector.shape_cast %9 : vector<96xf32> to vector<1x96xf32>
    %11 = vector.broadcast %10 : vector<1x96xf32> to vector<5x96xf32>
    %12 = arith.subf %6, %11 : vector<5x96xf32>
    %13 = math.exp %12 : vector<5x96xf32>
    %cst_7 = arith.constant dense<0.000000e+00> : vector<96xf32>
    %14 = vector.multi_reduction <add>, %13, %cst_7 [0] : vector<5x96xf32> to vector<96xf32>
    %15 = vector.shape_cast %14 : vector<96xf32> to vector<1x96xf32>
    %16 = math.log %15 : vector<1x96xf32>
    %17 = arith.addf %10, %16 : vector<1x96xf32>
    %18 = tpu.iota {dimensions = array<i32: 0>} : vector<5x96xi32>
    %19 = vector.broadcast %8 : vector<1x96xi32> to vector<5x96xi32>
    %20 = arith.cmpi eq, %18, %19 : vector<5x96xi32>
    %21 = arith.extui %20 : vector<5x96xi1> to vector<5x96xi32>
    %22 = arith.sitofp %21 : vector<5x96xi32> to vector<5x96xf32>
    %23 = arith.mulf %22, %6 : vector<5x96xf32>
    %cst_8 = arith.constant dense<0.000000e+00> : vector<96xf32>
    %24 = vector.multi_reduction <add>, %23, %cst_8 [0] : vector<5x96xf32> to vector<96xf32>
    %25 = vector.shape_cast %24 : vector<96xf32> to vector<1x96xf32>
    %26 = arith.subf %25, %17 : vector<1x96xf32>
    %27 = math.exp %26 : vector<1x96xf32>
    %cst_9 = arith.constant 1.000000e+00 : f32
    %28 = vector.broadcast %cst_9 : f32 to vector<1x96xf32>
    %29 = arith.subf %28, %27 : vector<1x96xf32>
    %cst_10 = arith.constant 0.000000e+00 : f32
    %30 = vector.broadcast %cst_10 : f32 to vector<1x96xf32>
    %31 = arith.maximumf %29, %30 : vector<1x96xf32>
    %32 = math.sqrt %31 : vector<1x96xf32>
    %cst_11 = arith.constant 0.000000e+00 : f32
    %33 = vector.broadcast %cst_11 : f32 to vector<1x96xf32>
    %34 = arith.subf %33, %32 : vector<1x96xf32>
    %35 = arith.mulf %34, %26 : vector<1x96xf32>
    %36 = tpu.iota {dimensions = array<i32: 1>} : vector<1x96xi32>
    %c96_i32 = arith.constant 96 : i32
    %37 = arith.muli %arg1, %c96_i32 : i32
    %38 = vector.broadcast %37 : i32 to vector<1x96xi32>
    %39 = arith.addi %36, %38 : vector<1x96xi32>
    %c96_i32_12 = arith.constant 96 : i32
    %40 = vector.broadcast %c96_i32_12 : i32 to vector<1x96xi32>
    %41 = arith.cmpi slt, %39, %40 : vector<1x96xi32>
    %cst_13 = arith.constant 0.000000e+00 : f32
    %42 = vector.broadcast %cst_13 : f32 to vector<1x96xf32>
    %43 = arith.select %41, %35, %42 : vector<1x96xi1>, vector<1x96xf32>
    %c0_14 = arith.constant 0 : index
    %c0_15 = arith.constant 0 : index
    %44 = vector.load %arg5[%c0_14, %c0_15] : memref<1x96xf32, #tpu.memory_space<vmem>>, vector<1x96xf32>
    %45 = arith.addf %44, %43 : vector<1x96xf32>
    %c0_16 = arith.constant 0 : index
    %c0_17 = arith.constant 0 : index
    %46 = vector.load %arg5[%c0_16, %c0_17] : memref<1x96xf32, #tpu.memory_space<vmem>>, vector<1x96xf32>
    tpu.vector_store %arg5[%c0_16, %c0_17], %45 {strides = array<i32>} : memref<1x96xf32, #tpu.memory_space<vmem>>, vector<1x96xf32>,
    %c0_i32_18 = arith.constant 0 : i32
    %47 = arith.cmpi eq, %arg0, %c0_i32_18 : i32
    %c0_i32_19 = arith.constant 0 : i32
    %48 = arith.cmpi eq, %arg1, %c0_i32_19 : i32
    %49 = arith.andi %47, %48 : i1
    %50 = arith.extui %49 : i1 to i32
    %c0_i32_20 = arith.constant 0 : i32
    %51 = arith.cmpi ne, %50, %c0_i32_20 : i32
    scf.if %51 {
      %c0_21 = arith.constant 0 : index
      %c0_22 = arith.constant 0 : index
      %52 = vector.load %arg5[%c0_21, %c0_22] : memref<1x96xf32, #tpu.memory_space<vmem>>, vector<1x96xf32>
      %53 = vector.shape_cast %52 : vector<1x96xf32> to vector<1x1x96xf32>
      %cst_23 = arith.constant dense<0.000000e+00> : vector<1xf32>
      %54 = vector.multi_reduction <add>, %53, %cst_23 [1, 2] : vector<1x1x96xf32> to vector<1xf32>
      %55 = vector.shape_cast %54 : vector<1xf32> to vector<1x1x1xf32>
      %56 = vector.extract %55[0, 0, 0] : f32 from vector<1x1x1xf32>
      %57 = vector.broadcast %56 : f32 to vector<1x1xf32>
      %cst_24 = arith.constant 0.010416667 : f32
      %58 = vector.broadcast %cst_24 : f32 to vector<1x1xf32>
      %59 = arith.mulf %57, %58 : vector<1x1xf32>
      %c0_25 = arith.constant 0 : index
      %c0_26 = arith.constant 0 : index
      %60 = vector.load %arg4[%c0_25, %c0_26] : memref<1x1xf32, #tpu.memory_space<vmem>>, vector<1x1xf32>
      tpu.vector_store %arg4[%c0_25, %c0_26], %59 {strides = array<i32>} : memref<1x1xf32, #tpu.memory_space<vmem>>, vector<1x1xf32>,
    } else {
    }
    return
  }
  func.func @transform_0(%arg0: i32, %arg1: i32) -> (i32, i32, i32) {
    %c0_i32 = arith.constant 0 : i32
    %c0_i32_0 = arith.constant 0 : i32
    return %arg0, %c0_i32, %arg1 : i32, i32, i32
  }
  func.func @transform_1(%arg0: i32, %arg1: i32) -> (i32, i32, i32) {
    %c0_i32 = arith.constant 0 : i32
    %c0_i32_0 = arith.constant 0 : i32
    return %arg0, %c0_i32, %arg1 : i32, i32, i32
  }
  func.func @transform_2(%arg0: i32, %arg1: i32) -> (i32, i32) {
    %c0_i32 = arith.constant 0 : i32
    %c0_i32_0 = arith.constant 0 : i32
    %c0_i32_1 = arith.constant 0 : i32
    return %c0_i32, %c0_i32_0 : i32, i32
  }
}

</mosaic_0001>

<bundles_post_ra>
// kernel: tpu_custom_call.1
= control target key start
LH: loop header
LB: loop body
LE: loop exit
PB: predicated region body
PF: predicated region fallthrough
CT: control target
= control target key end

     0   :  { %vm18_vm0 = vcmask 778240   ;;  %v154_v1 = vmov 0.0   ;;  %vm22_vm1 = vcmask 782336   ;;  %s195_s0 = inlined_call_operand.vmem [shape: f32[1,5,96], index: 0, kind: input, shape index: {}]   ;;  %s196_s1 = inlined_call_operand.vmem [shape: s32[1,1,96], index: 1, kind: input, shape index: {}]   ;;  %s197_s2 = inlined_call_operand.hbm [shape: f32[1,1], index: 2, kind: output, shape index: {}]  }
   0x1   :  { %v20_v0 = vld [vmem:[%s195_s0] sm:$0x1f]  ;;  %19 = vst.msk [vmem:[#allocation2] sm:$0x1] %vm18_vm0, %v154_v1 }
   0x2   :  { %7 = vsyncpa [#allocation4], 0  ;;  %v23_v2 = vsel %vm22_vm1, %v20_v0, -inf  ;;  %v43_v9 = vlaneseq  ;;  %v116_v13 = vld [vmem:[%s196_s1] ss:$0 sm:$0xff]  ;;  %s155_s0 = smov [#allocation3]  }
   0x3   :  { %v24_v3 = vrot.slane %v23_v2, 4  ;;  %s108_s1 = sshll.u32 %s155_s0, 4  ;;  %vm100_vm6 = vcmask 0   ;;  %s109_s1 = int_to_ptr.vmem [resolvable:$true] %s108_s1 }
   0x4   :  { %v44_v12 = vshrl.u32 %v43_v9, 7  ;;  %v75_v42 = vand.u32 127, %v43_v9  ;;  %s130_s14 = scalar_lea.vmem %s109_s1, 16  ;;  %s134_s15 = scalar_lea.vmem %s109_s1, 32 }
   0x5   :  { %v25_v4 = vmax.f32 %v23_v2, %v24_v3  ;;  %p131_p0 = scmp.ne.s32.totalorder %s109_s1, %s130_s14  ;;  %p135_p1 = scmp.lt.s32.totalorder %s109_s1, %s109_s1 }
   0x6   :  { %vm49_vm2 = vcmp.eq.s32.totalorder %v44_v12, %v116_v13  ;;  %vm79_vm5 = vcmp.lt.s32.totalorder %v75_v42, 96  ;;  %p136_p2 = scmp.lt.s32.totalorder %s134_s15, %s130_s14 }
   0x7   :  { %v26_v5 = vrot.slane %v25_v4, 2  ;;  %v117_v14 = vsel %vm49_vm2, 1.0, %v154_v1 }
   0x8   :  { %v52_v15 = vmul.f32 %v117_v14, %v20_v0  ;;  %v81_v47 = vld [vmem:[#allocation2] sm:$0x1]  ;;  %p137_p3 = por %p136_p2, %p135_p1 }
   0x9   :  { %v27_v6 = vmax.f32 %v25_v4, %v26_v5 }
   0xa   :  { %v53_v19 = vsel %vm22_vm1, %v52_v15, 0.0  ;;  %p138_p4 = pnand %p137_p3, %p131_p0 }
   0xb   :  { %v28_v7 = vrot.slane %v27_v6, 1  ;;  %v54_v21 = vrot.slane %v53_v19, 4 }
   0xd   :  { %v29_v8 = vmax.f32 %v27_v6, %v28_v7  ;;  %v55_v24 = vadd.f32 %v54_v21, %v53_v19 }
   0xf   :  { %v30_v10 = vsub.f32 %v20_v0, %v29_v8  ;;  %v56_v27 = vrot.slane %v55_v24, 2 }
  0x11   :  { %v31_v11 = vmul.f32 1.442695, %v30_v10  ;;  %v57_v28 = vadd.f32 %v56_v27, %v55_v24 }
  0x13   :  { %122 = vpow2.f32 %v31_v11  ;;  %v58_v29 = vrot.slane %v57_v28, 1 }
  0x15   :  { %v59_v32 = vadd.f32 %v58_v29, %v57_v28 }
  0x1d   :  { %v123_v16 = vpop.eup %122 }
  0x1e   :  { %v33_v17 = vsel %vm22_vm1, %v123_v16, 0.0 }
  0x1f   :  { %v34_v18 = vrot.slane %v33_v17, 4 }
  0x21   :  { %v35_v20 = vadd.f32 %v34_v18, %v33_v17 }
  0x23   :  { %v36_v22 = vrot.slane %v35_v20, 2 }
  0x25   :  { %v37_v23 = vadd.f32 %v36_v22, %v35_v20 }
  0x27   :  { %v38_v25 = vrot.slane %v37_v23, 1 }
  0x29   :  { %v39_v26 = vadd.f32 %v38_v25, %v37_v23 }
  0x2b   :  { %124 = vlog2.f32 %v39_v26 }
  0x35   :  { %v125_v30 = vpop.eup %124 }
  0x36   :  { %v41_v31 = vmul.f32 0.6931472, %v125_v30 }
  0x38   :  { %v42_v33 = vadd.f32 %v41_v31, %v29_v8 }
  0x3a   :  { %v60_v34 = vsub.f32 %v59_v32, %v42_v33 }
  0x3c   :  { %v61_v35 = vmul.f32 1.442695, %v60_v34 }
  0x3e   :  { %126 = vpow2.f32 %v61_v35 }
  0x48   :  { %v127_v36 = vpop.eup %126 }
  0x49   :  { %v63_v37 = vsub.f32 1.0, %v127_v36 }
  0x4b   :  { %v64_v38 = vmax.f32 %v63_v37, 0.0 }
  0x4d   :  { %128 = vrsqrt.f32 %v64_v38  ;;  %vm67_vm3 = vcmp.eq.f32.partialorder %v64_v38, inf  ;;  %v70_v40 = vand.u32 2147483648, %v64_v38  ;;  %vm69_vm4 = vcmp.eq.f32.partialorder %v64_v38, 0.0 }
  0x57   :  { %v129_v39 = vpop.eup %128 }
  0x58   :  { %v66_v41 = vmul.f32 %v129_v39, %v64_v38 }
  0x5a   :  { %v68_v43 = vsel %vm67_vm3, %v64_v38, %v66_v41 }
  0x5b   :  { %v71_v44 = vsel %vm69_vm4, %v70_v40, %v68_v43 }
  0x5c   :  { %v72_v45 = vsub.f32 0.0, %v71_v44 }
  0x5e   :  { %v73_v46 = vmul.f32 %v72_v45, %v60_v34 }
  0x60   :  { %v80_v48 = vsel %vm79_vm5, %v73_v46, 0.0 }
  0x61   :  { %v82_v49 = vadd.f32 %v81_v47, %v80_v48 }
  0x63   :  { %84 = vst.msk [vmem:[#allocation2] sm:$0x1] %vm18_vm0, %v82_v49 }
  0x6a   :  { %v87_v50 = vld [vmem:[#allocation2] sm:$0x1] }
  0x6b   :  { %v88_v51 = vsel %vm18_vm0, %v87_v50, 0.0 }
  0x6c   :  { %89 = vadd.xlane.f32.xlu0 %v88_v51 }
  0xf9   :  { %v90_v52 = vpop.xlane.xlu0 %89 }
  0xfa   :  { %v91_v53 = vrot.slane %v90_v52, 4 }
  0xfc   :  { %v92_v54 = vadd.f32 %v91_v53, %v90_v52 }
  0xfe   :  { %v93_v55 = vrot.slane %v92_v54, 2 }
 0x100   :  { %v94_v56 = vadd.f32 %v93_v55, %v92_v54 }
 0x102   :  { %v95_v57 = vrot.slane %v94_v56, 1 }
 0x104   :  { %v96_v58 = vadd.f32 %v95_v57, %v94_v56 }
 0x106   :  { %118 = vpush %v96_v58 }
 0x137   :  { %s119_s13 = spop %118 }
 0x138   :  { %v98_v59 = vstv %s119_s13 }
 0x139   :  { %v99_v60 = vmul.f32 0.010416667, %v98_v59 }
 0x13b   :  { %101 = vst.msk [vmem:[#allocation3] sm:$0x1] %vm100_vm6, %v99_v60 }
 0x13c   :  { %141 = shalt.err (!%p138_p4)
}
 0x13d   :  { %s142_s18 = scalar_lea.hbm %s197_s2, 16 }
 0x13e   :  { %p143_p5 = scmp.ne.s32.totalorder %s197_s2, %s142_s18  ;;  %p146_p6 = scmp.lt.u32.totalorder %s142_s18, %s197_s2 }
 0x140   :  { %p148_p7 = pnand %p146_p6, %p143_p5 }
 0x142   :  { %151 = shalt.err (!%p148_p7)
}
 0x143   :  { %111 = dma.vmem_to_hbm [thread:$0]  %s109_s1, 16, %s197_s2, [#allocation4]  }
 0x144   :  { %152 = dma.done.wait [#allocation4], 16  }
 0x145   :  { %153 = vsyncadd [#allocation4], 4294967280 }
 0x146   :  { %115 = vsyncpa [#allocation4], 1 }

</bundles_post_ra>
